<compile_context>
chip_gen: v6e
topology: v6e:2x2x1
jax: 0.10.0
libtpu: 0.0.40
codegen_flags: <defaults>
</compile_context>

<pallas_src>
import functools

import jax
import jax.numpy as jnp
from jax.experimental import pallas as pl
from jax.experimental.pallas import tpu as pltpu


def _myconv1d_kernel(xt_ref, wdwb_ref, w3_ref, bpw_ref, o_ref, acc_ref, *, taps):
    i = pl.program_id(1)          # rows (reduction) axis — innermost grid axis

    @pl.when(i == 0)
    def _init():
        acc_ref[...] = jnp.zeros_like(acc_ref)

    # ---- depthwise conv1d for this row block (taps pre-extracted in glue) ----
    y = jnp.zeros(xt_ref.shape[1:], jnp.float32)          # (row_block, l_out)
    for t in range(taps):                                  # static, small, unrolled
        y = y + xt_ref[t] * wdwb_ref[:, t:t + 1]
    y = y + wdwb_ref[:, taps:taps + 1]                     # depthwise bias

    # ---- pointwise contribution, reduced over the rows (plane) axis only ----
    # w3 block is (row_block, no_block, l_out); sum over axis 0 is plain vreg
    # adds on the VPU.  The lane reduce over l_out is deferred to the finalize.
    acc_ref[...] += jnp.sum(w3_ref[...] * y[:, None, :], axis=0)   # (no_block, l_out)

    @pl.when(i == pl.num_programs(1) - 1)
    def _finalize():
        col = jnp.sum(acc_ref[...], axis=-1, keepdims=True)        # (no_block, 1)
        o_ref[...] = jnp.maximum(col + bpw_ref[...], 0.0).astype(o_ref.dtype)


def _round_up(x, m):
    return (x + m - 1) // m * m


def _cdiv(a, b):
    return -(-a // b)


def my_conv1d(x, dw_weight, dw_bias, pw_weight, pw_bias, *, kernel, stride, pad,
              row_block=None, no_block=None, weight_dtype=None):
    """Forward pass of MyConv1d (inference).

    x:         (N, ni, L)       float32
    dw_weight: (ni, 1, kernel)  depthwise Conv1d weight (torch layout)
    dw_bias:   (ni,)
    pw_weight: (no, conv_out)   Linear weight (torch layout), conv_out = N*ni*L_out
    pw_bias:   (no,)
    returns:   (1, no)
    """
    n, ni, l = x.shape
    no, conv_out = pw_weight.shape
    l_out = (l + 2 * pad - kernel) // stride + 1
    rows = n * ni
    assert conv_out == rows * l_out, "conv_out must equal N*ni*L_out"

    w_dtype = jnp.float32 if weight_dtype is None else jnp.dtype(weight_dtype)
    w_item = jnp.dtype(w_dtype).itemsize

    # ---- generation-aware VMEM budget --------------------------------------
    try:
        vmem_cap = int(pltpu.get_tpu_info().vmem_capacity_bytes)
    except Exception:
        vmem_cap = 64 << 20                       # conservative (v7x per-core VMEM)
    budget = int(min(max(vmem_cap // 3, 12 << 20), 40 << 20))
    vmem_limit = int(min(vmem_cap - (8 << 20), budget + (16 << 20)))

    l_vmem = _round_up(l_out, 128)                # VMEM lane padding (accounting only)
    no_pad = _round_up(no, 8)

    # ---- output-feature tiling (v7x megacore / robustness for huge no*l_out) --
    if no_block is None:
        no_block = no_pad
    no_block = max(8, min(_round_up(no_block, 8), no_pad))
    while no_block > 8 and 2 * 8 * no_block * l_vmem * w_item > budget // 2:
        no_block = max(8, (no_block // 2) // 8 * 8)
    no_pad = _round_up(no_pad, no_block)
    n_no_blocks = no_pad // no_block

    # ---- row tiling: as big as the budget allows, minimal zero-row padding ----
    per_row = 2 * (no_block * l_vmem * w_item          # streamed W3 slab (double buffered)
                   + kernel * l_vmem * 4               # x_taps slab
                   + 128 * 4)                          # packed depthwise w+b row
    fixed = no_block * l_vmem * 4 + (1 << 20)          # accumulator + margin
    max_row_block = max(8, ((budget - fixed) // per_row) // 8 * 8)
    rows_ceil8 = _round_up(rows, 8)
    if row_block is None:
        target = max(8, min(max_row_block, rows_ceil8))
        n_row_blocks = _cdiv(rows, target)
        row_block = _round_up(_cdiv(rows, n_row_blocks), 8)
    else:
        row_block = max(8, min(_round_up(row_block, 8), rows_ceil8))
    n_row_blocks = _cdiv(rows, row_block)
    rows_pad = n_row_blocks * row_block
    grid = (n_no_blocks, n_row_blocks)

    # ---- glue (plain XLA, runs once outside the kernel) ----------------------
    x_rows = jnp.pad(x, ((0, 0), (0, 0), (pad, pad))).reshape(rows, l + 2 * pad)
    # im2col over the tap axis: x_taps[t] = x_rows[:, t : t + stride*l_out : stride]
    x_taps = jnp.stack(
        [x_rows[:, t:t + stride * l_out:stride] for t in range(kernel)], axis=0)
    x_taps = jnp.pad(x_taps, ((0, 0), (0, rows_pad - rows), (0, 0)))   # (K, rows_pad, l_out)

    # packed per-row depthwise filter + bias: (rows_pad, K+1)
    wdwb = jnp.concatenate(
        [jnp.tile(dw_weight[:, 0, :], (n, 1)),              # (rows, K)
         jnp.tile(dw_bias[:, None], (n, 1))], axis=1)       # (rows, 1)
    wdwb = jnp.pad(wdwb, ((0, rows_pad - rows), (0, 0)))

    # pointwise weight rearranged so no flatten is needed in-kernel:
    # torch flatten order is r = batch*ni + channel major, l minor -> (no, rows, l_out)
    w3 = pw_weight.reshape(no, rows, l_out).transpose(1, 0, 2)          # (rows, no, l_out)
    w3 = jnp.pad(w3, ((0, rows_pad - rows), (0, no_pad - no), (0, 0)))
    if weight_dtype is not None:
        # bf16 halves the dominant HBM stream on v6e/v7x (numerics change);
        # avoid bf16 + this VPU path on v5e (no bf16 VALU).
        w3 = w3.astype(w_dtype)
    bpw = jnp.pad(pw_bias, (0, no_pad - no))[:, None]                   # (no_pad, 1)

    kern = functools.partial(_myconv1d_kernel, taps=kernel)

    bytes_accessed = int(x_taps.size * 4 + wdwb.size * 4
                         + w3.size * w3.dtype.itemsize + bpw.size * 4 + no_pad * 4)
    cost = pl.CostEstimate(
        flops=int(2 * kernel * rows * l_out + 2 * rows * l_out * no),
        transcendentals=0,
        bytes_accessed=bytes_accessed)

    out_col = pl.pallas_call(
        kern,
        out_shape=jax.ShapeDtypeStruct((no_pad, 1), x.dtype),
        grid_spec=pltpu.PrefetchScalarGridSpec(
            num_scalar_prefetch=0,
            grid=grid,
            in_specs=[
                pl.BlockSpec((kernel, row_block, l_out), lambda j, i: (0, i, 0)),
                pl.BlockSpec((row_block, kernel + 1), lambda j, i: (i, 0)),
                pl.BlockSpec((row_block, no_block, l_out), lambda j, i: (i, j, 0)),
                pl.BlockSpec((no_block, 1), lambda j, i: (j, 0)),
            ],
            out_specs=pl.BlockSpec((no_block, 1), lambda j, i: (j, 0)),
            scratch_shapes=[pltpu.VMEM((no_block, l_out), jnp.float32)],
        ),
        compiler_params=pltpu.CompilerParams(
            dimension_semantics=("parallel", "arbitrary"),
            vmem_limit_bytes=vmem_limit),
        cost_estimate=cost,
    )(x_taps, wdwb, w3, bpw)

    return out_col[:no].T                       # (1, no), module's output layout


def _reference(x, dw_weight, dw_bias, pw_weight, pw_bias, *, kernel, stride, pad):
    """Plain-JAX reference mirroring the PyTorch module."""
    n, ni, l = x.shape
    l_out = (l + 2 * pad - kernel) // stride + 1
    x_pad = jnp.pad(x, ((0, 0), (0, 0), (pad, pad)))
    y = jnp.zeros((n, ni, l_out), jnp.float32)
    for t in range(kernel):
        y = y + x_pad[:, :, t:t + stride * l_out:stride] * dw_weight[None, :, 0, t:t + 1]
    y = y + dw_bias[None, :, None]
    out = y.reshape(1, -1) @ pw_weight.T + pw_bias[None, :]
    return jnp.maximum(out, 0.0)


if __name__ == "__main__":
    def _run_case(key, n, ni, l, k, stride, pad, no, row_block=None, no_block=None):
        l_out = (l + 2 * pad - k) // stride + 1
        conv_out = n * ni * l_out
        kx, kw1, kb1, kw2, kb2 = jax.random.split(key, 5)
        x = jax.random.normal(kx, (n, ni, l), jnp.float32)
        dw_w = jax.random.normal(kw1, (ni, 1, k), jnp.float32) * 0.1
        dw_b = jax.random.normal(kb1, (ni,), jnp.float32) * 0.1
        pw_w = jax.random.normal(kw2, (no, conv_out), jnp.float32) * 0.1
        pw_b = jax.random.normal(kb2, (no,), jnp.float32) * 0.1

        out = my_conv1d(x, dw_w, dw_b, pw_w, pw_b,
                        kernel=k, stride=stride, pad=pad,
                        row_block=row_block, no_block=no_block)
        out = jax.block_until_ready(out)

        ref = _reference(x, dw_w, dw_b, pw_w, pw_b, kernel=k, stride=stride, pad=pad)
        assert out.shape == (1, no)
        assert jnp.allclose(out, ref, atol=1e-4, rtol=1e-4), "mismatch vs reference"

    root = jax.random.PRNGKey(0)
    k1, k2, k3 = jax.random.split(root, 3)

    # batch=2, channels=4, length=16 (shapes implied by the module's forward):
    # kernel=3, stride=1, pad=1 -> L_out=16, conv_out=128, no=8
    _run_case(k1, n=2, ni=4, l=16, k=3, stride=1, pad=1, no=8)

    # Multi-step rows accumulation (rows=32, row_block=8 -> 4 reduction steps),
    # stride=2 covers the general strided-tap path.
    _run_case(k2, n=4, ni=8, l=32, k=5, stride=2, pad=2, no=16, row_block=8)

    # Padded rows (15 -> 16), padded output features (20 -> 24) and a 2-axis
    # grid (3 no-blocks x 2 rows-blocks) to exercise the parallel no axis.
    _run_case(k3, n=3, ni=5, l=20, k=3, stride=2, pad=1, no=20,
              row_block=8, no_block=8)

    # TODO(synk): Dropout (drop=None default) is an inference-time identity; not implemented.
    print("KERNEL_OK")
</pallas_src>

<mosaic_0001>
module attributes {stable_mosaic.version = 11 : i64} {
  func.func @_myconv1d_kernel(%arg0: i32, %arg1: i32, %arg2: memref<3x8x16xf32, #tpu.memory_space<vmem>>, %arg3: memref<8x4xf32, #tpu.memory_space<vmem>>, %arg4: memref<8x8x16xf32, #tpu.memory_space<vmem>>, %arg5: memref<8x1xf32, #tpu.memory_space<vmem>>, %arg6: memref<8x1xf32, #tpu.memory_space<vmem>>, %arg7: memref<8x16xf32, #tpu.memory_space<vmem>>) attributes {dimension_semantics = [#tpu.dimension_semantics<parallel>, #tpu.dimension_semantics<arbitrary>], iteration_bounds = array<i64: 1, 1>, scalar_prefetch = 0 : i64, scratch_operands = 1 : i64, tpu.core_type = #tpu.core_type<tc>, window_params = [{transform_indices = @transform_0, window_bounds = array<i64: 3, 8, 16>}, {transform_indices = @transform_1, window_bounds = array<i64: 8, 4>}, {transform_indices = @transform_2, window_bounds = array<i64: 8, 8, 16>}, {transform_indices = @transform_3, window_bounds = array<i64: 8, 1>}, {transform_indices = @transform_4, window_bounds = array<i64: 8, 1>}]} {
    %c0_i32 = arith.constant 0 : i32
    %0 = arith.cmpi eq, %arg1, %c0_i32 : i32
    %1 = arith.extui %0 : i1 to i32
    %c0_i32_0 = arith.constant 0 : i32
    %2 = arith.cmpi ne, %1, %c0_i32_0 : i32
    scf.if %2 {
      %cst_24 = arith.constant 0.000000e+00 : f32
      %36 = vector.broadcast %cst_24 : f32 to vector<8x16xf32>
      %c0_25 = arith.constant 0 : index
      %c0_26 = arith.constant 0 : index
      %37 = vector.load %arg7[%c0_25, %c0_26] : memref<8x16xf32, #tpu.memory_space<vmem>>, vector<8x16xf32>
      tpu.vector_store %arg7[%c0_25, %c0_26], %36 {strides = array<i32>} : memref<8x16xf32, #tpu.memory_space<vmem>>, vector<8x16xf32>,
    } else {
    }
    %cst = arith.constant 0.000000e+00 : f32
    %3 = vector.broadcast %cst : f32 to vector<8x16xf32>
    %c0 = arith.constant 0 : index
    %c0_1 = arith.constant 0 : index
    %c0_2 = arith.constant 0 : index
    %4 = vector.load %arg2[%c0, %c0_1, %c0_2] : memref<3x8x16xf32, #tpu.memory_space<vmem>>, vector<1x8x16xf32>
    %5 = vector.shape_cast %4 : vector<1x8x16xf32> to vector<8x16xf32>
    %c0_3 = arith.constant 0 : index
    %c0_4 = arith.constant 0 : index
    %6 = vector.load %arg3[%c0_3, %c0_4] : memref<8x4xf32, #tpu.memory_space<vmem>>, vector<8x1xf32>
    %7 = vector.broadcast %6 : vector<8x1xf32> to vector<8x16xf32>
    %8 = arith.mulf %5, %7 : vector<8x16xf32>
    %9 = arith.addf %3, %8 : vector<8x16xf32>
    %c1 = arith.constant 1 : index
    %c0_5 = arith.constant 0 : index
    %c0_6 = arith.constant 0 : index
    %10 = vector.load %arg2[%c1, %c0_5, %c0_6] : memref<3x8x16xf32, #tpu.memory_space<vmem>>, vector<1x8x16xf32>
    %11 = vector.shape_cast %10 : vector<1x8x16xf32> to vector<8x16xf32>
    %c0_7 = arith.constant 0 : index
    %c1_8 = arith.constant 1 : index
    %12 = vector.load %arg3[%c0_7, %c1_8] : memref<8x4xf32, #tpu.memory_space<vmem>>, vector<8x1xf32>
    %13 = vector.broadcast %12 : vector<8x1xf32> to vector<8x16xf32>
    %14 = arith.mulf %11, %13 : vector<8x16xf32>
    %15 = arith.addf %9, %14 : vector<8x16xf32>
    %c2 = arith.constant 2 : index
    %c0_9 = arith.constant 0 : index
    %c0_10 = arith.constant 0 : index
    %16 = vector.load %arg2[%c2, %c0_9, %c0_10] : memref<3x8x16xf32, #tpu.memory_space<vmem>>, vector<1x8x16xf32>
    %17 = vector.shape_cast %16 : vector<1x8x16xf32> to vector<8x16xf32>
    %c0_11 = arith.constant 0 : index
    %c2_12 = arith.constant 2 : index
    %18 = vector.load %arg3[%c0_11, %c2_12] : memref<8x4xf32, #tpu.memory_space<vmem>>, vector<8x1xf32>
    %19 = vector.broadcast %18 : vector<8x1xf32> to vector<8x16xf32>
    %20 = arith.mulf %17, %19 : vector<8x16xf32>
    %21 = arith.addf %15, %20 : vector<8x16xf32>
    %c0_13 = arith.constant 0 : index
    %c3 = arith.constant 3 : index
    %22 = vector.load %arg3[%c0_13, %c3] : memref<8x4xf32, #tpu.memory_space<vmem>>, vector<8x1xf32>
    %23 = vector.broadcast %22 : vector<8x1xf32> to vector<8x16xf32>
    %24 = arith.addf %21, %23 : vector<8x16xf32>
    %c0_14 = arith.constant 0 : index
    %c0_15 = arith.constant 0 : index
    %25 = vector.load %arg7[%c0_14, %c0_15] : memref<8x16xf32, #tpu.memory_space<vmem>>, vector<8x16xf32>
    %c0_16 = arith.constant 0 : index
    %c0_17 = arith.constant 0 : index
    %c0_18 = arith.constant 0 : index
    %26 = vector.load %arg4[%c0_16, %c0_17, %c0_18] : memref<8x8x16xf32, #tpu.memory_space<vmem>>, vector<8x8x16xf32>
    %27 = vector.shape_cast %24 : vector<8x16xf32> to vector<8x1x16xf32>
    %28 = vector.broadcast %27 : vector<8x1x16xf32> to vector<8x8x16xf32>
    %29 = arith.mulf %26, %28 : vector<8x8x16xf32>
    %cst_19 = arith.constant dense<0.000000e+00> : vector<8x16xf32>
    %30 = vector.multi_reduction <add>, %29, %cst_19 [0] : vector<8x8x16xf32> to vector<8x16xf32>
    %31 = arith.addf %25, %30 : vector<8x16xf32>
    %c0_20 = arith.constant 0 : index
    %c0_21 = arith.constant 0 : index
    %32 = vector.load %arg7[%c0_20, %c0_21] : memref<8x16xf32, #tpu.memory_space<vmem>>, vector<8x16xf32>
    tpu.vector_store %arg7[%c0_20, %c0_21], %31 {strides = array<i32>} : memref<8x16xf32, #tpu.memory_space<vmem>>, vector<8x16xf32>,
    %c0_i32_22 = arith.constant 0 : i32
    %33 = arith.cmpi eq, %arg1, %c0_i32_22 : i32
    %34 = arith.extui %33 : i1 to i32
    %c0_i32_23 = arith.constant 0 : i32
    %35 = arith.cmpi ne, %34, %c0_i32_23 : i32
    scf.if %35 {
      %c0_24 = arith.constant 0 : index
      %c0_25 = arith.constant 0 : index
      %36 = vector.load %arg7[%c0_24, %c0_25] : memref<8x16xf32, #tpu.memory_space<vmem>>, vector<8x16xf32>
      %cst_26 = arith.constant dense<0.000000e+00> : vector<8xf32>
      %37 = vector.multi_reduction <add>, %36, %cst_26 [1] : vector<8x16xf32> to vector<8xf32>
      %38 = vector.shape_cast %37 : vector<8xf32> to vector<8x1xf32>
      %c0_27 = arith.constant 0 : index
      %c0_28 = arith.constant 0 : index
      %39 = vector.load %arg5[%c0_27, %c0_28] : memref<8x1xf32, #tpu.memory_space<vmem>>, vector<8x1xf32>
      %40 = arith.addf %38, %39 : vector<8x1xf32>
      %cst_29 = arith.constant 0.000000e+00 : f32
      %41 = vector.broadcast %cst_29 : f32 to vector<8x1xf32>
      %42 = arith.maximumf %40, %41 : vector<8x1xf32>
      %c0_30 = arith.constant 0 : index
      %c0_31 = arith.constant 0 : index
      %43 = vector.load %arg6[%c0_30, %c0_31] : memref<8x1xf32, #tpu.memory_space<vmem>>, vector<8x1xf32>
      tpu.vector_store %arg6[%c0_30, %c0_31], %42 {strides = array<i32>} : memref<8x1xf32, #tpu.memory_space<vmem>>, vector<8x1xf32>,
    } else {
    }
    return
  }
  func.func @transform_0(%arg0: i32, %arg1: i32) -> (i32, i32, i32) {
    %c0_i32 = arith.constant 0 : i32
    %c0_i32_0 = arith.constant 0 : i32
    %c0_i32_1 = arith.constant 0 : i32
    return %c0_i32, %arg1, %c0_i32_0 : i32, i32, i32
  }
  func.func @transform_1(%arg0: i32, %arg1: i32) -> (i32, i32) {
    %c0_i32 = arith.constant 0 : i32
    %c0_i32_0 = arith.constant 0 : i32
    return %arg1, %c0_i32 : i32, i32
  }
  func.func @transform_2(%arg0: i32, %arg1: i32) -> (i32, i32, i32) {
    %c0_i32 = arith.constant 0 : i32
    %c0_i32_0 = arith.constant 0 : i32
    return %arg1, %arg0, %c0_i32 : i32, i32, i32
  }
  func.func @transform_3(%arg0: i32, %arg1: i32) -> (i32, i32) {
    %c0_i32 = arith.constant 0 : i32
    %c0_i32_0 = arith.constant 0 : i32
    return %arg0, %c0_i32 : i32, i32
  }
  func.func @transform_4(%arg0: i32, %arg1: i32) -> (i32, i32) {
    %c0_i32 = arith.constant 0 : i32
    %c0_i32_0 = arith.constant 0 : i32
    return %arg0, %c0_i32 : i32, i32
  }
}

</mosaic_0001>

<bundles_post_ra>
// kernel: tpu_custom_call.1
= control target key start
LH: loop header
LB: loop body
LE: loop exit
PB: predicated region body
PF: predicated region fallthrough
CT: control target
= control target key end

     0   :  { %9 = vsyncpa [#allocation4], 0  ;;  %s344_s0 = inlined_call_operand.hbm [shape: f32[3,8,16], index: 0, kind: input, shape index: {}]   ;;  %s345_s1 = inlined_call_operand.vmem [shape: f32[8,4], index: 1, kind: input, shape index: {}]   ;;  %s346_s2 = inlined_call_operand.hbm [shape: f32[8,8,16], index: 2, kind: input, shape index: {}]   ;;  %s347_s3 = inlined_call_operand.vmem [shape: f32[8,1], index: 3, kind: input, shape index: {}]   ;;  %s348_s4 = inlined_call_operand.vmem [shape: f32[8,1], index: 4, kind: output, shape index: {}]  }
   0x1   :  { %10 = vsyncpa [#allocation6], 0  ;;  %s283_s15 = smov [#allocation3]  }
   0x2   :  { %s16_s16 = sshll.u32 %s283_s15, 4  ;;  %s17_s16 = int_to_ptr.vmem [resolvable:$true] %s16_s16 }
   0x3   :  { %s247_s17 = scalar_lea.vmem %s17_s16, 384  ;;  %p252_p1 = scmp.lt.s32.totalorder %s17_s16, %s17_s16 }
   0x4   :  { %p248_p0 = scmp.ne.s32.totalorder %s17_s16, %s247_s17  ;;  %p253_p2 = scmp.lt.s32.totalorder %s247_s17, %s247_s17 }
   0x6   :  { %p254_p3 = por %p253_p2, %p252_p1 }
   0x8   :  { %p255_p4 = pnand %p254_p3, %p248_p0 }
   0xa   :  { %258 = shalt.err (!%p255_p4)
}
   0xb   :  { %s284_s18 = smov 128   ;;  %s285_s19 = smov 8  }
   0xc   :  { %22 = dma.hbm_to_vmem [thread:$0]  %s344_s0, 384, %s17_s16, [#allocation4], %s284_s18, %s284_s18, %s285_s19  }
   0xd   :  { %s286_s22 = smov [#allocation5]  }
   0xe   :  { %s30_s23 = sshll.u32 %s286_s22, 4  ;;  %s31_s23 = int_to_ptr.vmem [resolvable:$true] %s30_s23 }
   0xf   :  { %s267_s24 = scalar_lea.vmem %s31_s23, 1024  ;;  %p272_p6 = scmp.lt.s32.totalorder %s31_s23, %s31_s23 }
  0x10   :  { %p268_p5 = scmp.ne.s32.totalorder %s31_s23, %s267_s24  ;;  %p273_p7 = scmp.lt.s32.totalorder %s267_s24, %s267_s24 }
  0x12   :  { %p274_p8 = por %p273_p7, %p272_p6 }
  0x14   :  { %p275_p9 = pnand %p274_p8, %p268_p5 }
  0x16   :  { %278 = shalt.err (!%p275_p9)
}
  0x17   :  { %36 = dma.hbm_to_vmem [thread:$0]  %s346_s2, 1024, %s31_s23, [#allocation6], %s284_s18, %s284_s18, %s285_s19  }
  0x18   :  { %279 = dma.done.wait [#allocation4], 384  }
  0x19   :  { %280 = vsyncadd [#allocation4], 4294966912 }
  0x1a   :  { %281 = dma.done.wait [#allocation6], 1024  }
  0x1b   :  { %282 = vsyncadd [#allocation6], 4294966272  ;;  %v287_v0 = vmov 0   ;;  %v288_v1 = vmov 2   ;;  %v52_v2 = vld [vmem:[%s345_s1] sm:$0xff]  ;;  %vm49_vm0 = vcmask 130048   ;;  %v95_v9 = vlaneseq }
  0x1c   :  { %234 = vset.pattern.permute.xlu0 %v287_v0  ;;  %236 = vset.pattern.permute.xlu1 %v288_v1  ;;  %v289_v3 = vmov 1   ;;  %v290_v4 = vmov 3   ;;  %v291_v5 = vmov 0.0   ;;  %v292_v7 = vmov 1966171168   ;;  %v51_v10 = vld [vmem:[#allocation3] sm:$0xff] }
  0x1d   :  { %55 = vperm.xlu0 %234, %v52_v2   ;;  %71 = vperm.xlu1 %236, %v52_v2   ;;  %50 = vst.msk [vmem:[#allocation2] sm:$0xff] %vm49_vm0, %v291_v5  ;;  %v93_v8 = vunpack.c.l.s4 %v292_v7  ;;  %v61_v11 = vld [vmem:[#allocation3 + $0x8] sm:$0xff]  ;;  %v69_v12 = vld [vmem:[#allocation3 + $0x10] sm:$0xff]  ;;  %v96_v19 = vshrl.u32 %v95_v9, 7  ;;  %v82_v31 = vld [vmem:[#allocation5] sm:$0xff]  ;;  %vm216_vm1 = vcmask 7168  }
  0x1e   :  { %v83_v37 = vld [vmem:[#allocation5 + $0x8] sm:$0xff]  ;;  %v84_v38 = vld [vmem:[#allocation5 + $0x10] sm:$0xff]  ;;  %v85_v44 = vld [vmem:[#allocation5 + $0x18] sm:$0xff] }
  0x1f   :  { %v94_v15 = vunpack.c.0.s8 %v93_v8  ;;  %v142_v27 = vsub.s32 0, %v96_v19  ;;  %v86_v50 = vld [vmem:[#allocation5 + $0x20] sm:$0xff]  ;;  %v87_v56 = vld [vmem:[#allocation5 + $0x28] sm:$0xff]  ;;  %v88_v61 = vld [vmem:[#allocation5 + $0x30] sm:$0xff] }
  0x21   :  { %235 = vset.pattern.permute.xlu0 %v289_v3  ;;  %237 = vset.pattern.permute.xlu1 %v290_v4  ;;  %v97_v22 = vsub.s32 %v94_v15, %v96_v19 }
  0x22   :  { %63 = vperm.xlu0 %235, %v52_v2   ;;  %77 = vperm.xlu1 %237, %v52_v2   ;;  %v89_v2 = vld [vmem:[#allocation5 + $0x38] sm:$0xff] }
  0x26   :  { %238 = vset.pattern.permute.xlu0 %v290_v4 }
  0x98   :  { %v56_v6 = vpop.permute.xlu0 %55  ;;  %v72_v13 = vpop.permute.xlu1 %71 }
  0x99   :  { %v58_v16 = vmul.f32 %v56_v6, %v51_v10  ;;  %v74_v18 = vmul.f32 %v72_v13, %v69_v12  ;;  %v81_v12 = vld [vmem:[#allocation2] sm:$0xff] }
  0x9d   :  { %v64_v14 = vpop.permute.xlu0 %63  ;;  %v78_v21 = vpop.permute.xlu1 %77 }
  0x9e   :  { %v66_v17 = vmul.f32 %v64_v14, %v61_v11 }
  0xa0   :  { %v67_v20 = vadd.f32 %v66_v17, %v58_v16 }
  0xa2   :  { %v75_v23 = vadd.f32 %v74_v18, %v67_v20  ;;  %v213_v18 = vld [vmem:[%s347_s3] sm:$0xff] }
  0xa4   :  { %v80_v24 = vadd.f32 %v78_v21, %v75_v23 }
  0xa6   :  { %v91_v25 = vcombine.high %v80_v24, %v80_v24  ;;  %v98_v26 = vrot.slane %v80_v24, %v97_v22 }
  0xa8   :  { %v105_v28 = vrot.slane %v91_v25, %v97_v22  ;;  %v106_v29 = vcombine.high %v98_v26, %v98_v26  ;;  %v114_v30 = vrot.slane %v98_v26, %v97_v22 }
  0xaa   :  { %v107_v32 = vcombine.high %v105_v28, %v105_v28  ;;  %v128_v33 = vrot.slane %v106_v29, %v97_v22  ;;  %v136_v34 = vcombine.high %v114_v30, %v114_v30  ;;  %v121_v35 = vrot.slane %v105_v28, %v97_v22 }
  0xab   :  { %v143_v36 = vrot.slane %v114_v30, %v142_v27 }
  0xac   :  { %v135_v39 = vrot.slane %v107_v32, %v97_v22  ;;  %v138_v40 = vcombine.high %v128_v33, %v128_v33  ;;  %v147_v41 = vrot.slane %v128_v33, %v142_v27  ;;  %v151_v42 = vrot.slane %v136_v34, %v142_v27 }
  0xad   :  { %v180_v43 = vmul.f32 %v143_v36, %v82_v31  ;;  %v137_v46 = vcombine.high %v121_v35, %v121_v35  ;;  %v159_v47 = vrot.slane %v121_v35, %v142_v27 }
  0xae   :  { %v155_v45 = vrot.slane %v138_v40, %v142_v27  ;;  %v181_v48 = vmul.f32 %v147_v41, %v83_v37  ;;  %v182_v49 = vmul.f32 %v151_v42, %v84_v38  ;;  %v139_v51 = vcombine.high %v135_v39, %v135_v39 }
  0xaf   :  { %v163_v52 = vrot.slane %v135_v39, %v142_v27  ;;  %v189_v54 = vsel %vm49_vm0, %v180_v43, 0.0  ;;  %v167_v58 = vrot.slane %v137_v46, %v142_v27  ;;  %v184_v59 = vmul.f32 %v159_v47, %v86_v50 }
  0xb0   :  { %v183_v53 = vmul.f32 %v155_v45, %v85_v44  ;;  %v190_v55 = vsel %vm49_vm0, %v181_v48, 0.0  ;;  %v192_v60 = vsel %vm49_vm0, %v182_v49, 0.0  ;;  %v171_v63 = vrot.slane %v139_v51, %v142_v27 }
  0xb1   :  { %v191_v57 = vadd.f32 %v190_v55, %v189_v54  ;;  %v185_v0 = vmul.f32 %v163_v52, %v87_v56  ;;  %v186_v4 = vmul.f32 %v167_v58, %v88_v61  ;;  %v196_v5 = vsel %vm49_vm0, %v184_v59, 0.0 }
  0xb2   :  { %v194_v1 = vsel %vm49_vm0, %v183_v53, 0.0  ;;  %v187_v7 = vmul.f32 %v171_v63, %v89_v2 }
  0xb3   :  { %v193_v62 = vadd.f32 %v192_v60, %v191_v57  ;;  %v198_v8 = vsel %vm49_vm0, %v185_v0, 0.0  ;;  %v200_v10 = vsel %vm49_vm0, %v186_v4, 0.0 }
  0xb4   :  { %v202_v13 = vsel %vm49_vm0, %v187_v7, 0.0 }
  0xb5   :  { %v195_v3 = vadd.f32 %v194_v1, %v193_v62 }
  0xb7   :  { %v197_v6 = vadd.f32 %v196_v5, %v195_v3 }
  0xb9   :  { %v199_v9 = vadd.f32 %v198_v8, %v197_v6 }
  0xbb   :  { %v201_v11 = vadd.f32 %v200_v10, %v199_v9 }
  0xbd   :  { %v203_v14 = vadd.f32 %v202_v13, %v201_v11 }
  0xbf   :  { %v204_v15 = vadd.f32 %v203_v14, %v81_v12 }
  0xc1   :  { %205 = vst.msk [vmem:[#allocation2] sm:$0xff] %vm49_vm0, %v204_v15 }
  0xc8   :  { %v209_v16 = vld [vmem:[#allocation2] sm:$0xff] }
  0xc9   :  { %v210_v17 = vsel %vm49_vm0, %v209_v16, 0.0 }
  0xca   :  { %211 = vadd.xlane.f32.xlu1 %v210_v17 }
 0x153   :  { %v212_v19 = vpop.xlane.xlu1 %211 }
 0x154   :  { %v214_v20 = vadd.f32 %v213_v18, %v212_v19 }
 0x156   :  { %v215_v21 = vmax.f32 %v214_v20, 0.0 }
 0x158   :  { %217 = vst.msk [vmem:[%s348_s4] sm:$0xff] %vm216_vm1, %v215_v21 }
 0x159   :  { %222 = vsyncpa [#allocation4], 1 }
 0x15a   :  { %223 = vsyncpa [#allocation6], 1 }

</bundles_post_ra>
